<compile_context>
chip_gen: v7x
topology: tpu7x:2x2x1
jax: 0.10.0
libtpu: 0.0.40
codegen_flags: <defaults>
</compile_context>

<pallas_src>
import functools

import numpy as np
import jax
import jax.numpy as jnp
from jax.experimental import pallas as pl
from jax.experimental.pallas import tpu as pltpu

HMAX = 128        # padded hidden width (lane-aligned; all hidden dims <= 128)
TB_TARGET = 512   # target batch-tile rows (>=512-row tiles ~85% of HBM roofline)


def _round_up(x, m):
    return ((x + m - 1) // m) * m


def _layer_dims(n_features, n_labels, num_layers=10, neuron_incr=10):
    """Reproduce CustomNetRegression.get_layers width schedule."""
    dims = [n_features]
    cur = n_features
    for layer in range(num_layers):
        if layer <= round(num_layers / 2):
            nxt = cur + neuron_incr
        else:
            nxt = cur - neuron_incr
        dims.append(nxt)
        cur = nxt
    dims.append(n_labels)  # final Linear
    return dims


def _init_params(key, dims):
    """PyTorch-Linear-style init: U(-1/sqrt(fan_in), 1/sqrt(fan_in)).

    Weights stored transposed, i.e. W_i has shape (in_i, out_i) so forward is
    x @ W_i + b_i.
    """
    weights, biases = [], []
    for i in range(len(dims) - 1):
        fan_in, fan_out = dims[i], dims[i + 1]
        key, kw, kb = jax.random.split(key, 3)
        bound = 1.0 / np.sqrt(fan_in)
        w = jax.random.uniform(kw, (fan_in, fan_out), jnp.float32, -bound, bound)
        b = jax.random.uniform(kb, (fan_out,), jnp.float32, -bound, bound)
        weights.append(w)
        biases.append(b)
    return weights, biases


def pad_params(weights, biases, n_features):
    """One-time host-side packing (call at model-build time, NOT per forward).

    First layer kept separate so the input only needs feature-padding to a
    multiple of 8 (sublane), not to 128 lanes.  Weights stored bf16
    (MXU-native); biases stay f32 and are added after f32 accumulation.
    Zero-padded weight columns + zero bias lanes keep padded activation lanes
    at exactly 0 through every ReLU, so no masking is needed in the kernel.
    """
    assert weights[0].shape[0] == n_features
    # Every layer's in/out width must fit the 128-lane padded hidden dim.
    assert max(max(w.shape) for w in weights[1:]) <= HMAX, \
        f"hidden width exceeds HMAX={HMAX}"
    assert weights[0].shape[1] <= HMAX

    nf_pad = _round_up(n_features, 8)
    n_layers = len(weights)

    w0 = np.zeros((nf_pad, HMAX), np.float32)
    b0 = np.zeros((1, HMAX), np.float32)
    fi, fo = weights[0].shape
    w0[:fi, :fo] = np.asarray(weights[0])
    b0[0, :fo] = np.asarray(biases[0])

    w_rest = np.zeros((n_layers - 1, HMAX, HMAX), np.float32)
    b_rest = np.zeros((n_layers - 1, 1, HMAX), np.float32)
    for i in range(1, n_layers):
        fi, fo = weights[i].shape
        w_rest[i - 1, :fi, :fo] = np.asarray(weights[i])
        b_rest[i - 1, 0, :fo] = np.asarray(biases[i])

    return (jnp.asarray(w0, jnp.bfloat16),
            jnp.asarray(b0, jnp.float32),
            jnp.asarray(w_rest, jnp.bfloat16),
            jnp.asarray(b_rest, jnp.float32))


def mlp_kernel(x_ref, w0_ref, b0_ref, w_ref, b_ref, out_ref):
    """Whole MLP on one (TB, *) batch tile.

    bf16 operands on the MXU with f32 accumulation.  Bias-add + ReLU are done
    in f32 on the MXU result, then the activation is immediately down-cast to
    bf16 before being carried to the next layer (halves the inter-layer VMEM
    round-trip; f32 math on the VALU keeps v5e happy).  Dropout = identity
    (eval mode).
    """
    acc = jnp.dot(x_ref[...], w0_ref[...], preferred_element_type=jnp.float32)
    h = jnp.maximum(acc + b0_ref[...], 0.0).astype(jnp.bfloat16)

    n_rest = w_ref.shape[0]
    for i in range(n_rest):                       # static unroll (9 hidden + final)
        acc = jnp.dot(h, w_ref[i], preferred_element_type=jnp.float32)
        if i < n_rest - 1:
            # ReLU; Dropout(p=0.5) is identity in eval mode.
            h = jnp.maximum(acc + b_ref[i], 0.0).astype(jnp.bfloat16)
        else:
            # Final Linear: bf16 writeback (output was ~90% of HBM traffic).
            out_ref[...] = (acc + b_ref[i]).astype(out_ref.dtype)


def _choose_tile(B):
    """Pick (tb, b_pad) minimizing padding slack; >=2 grid steps when B>256
    so the 'parallel' batch axis can shard across v7x's two TensorCores."""
    n_tiles = max(1, pl.cdiv(B, TB_TARGET))
    if B > 256:
        n_tiles = max(n_tiles, 2)
    tb = _round_up(pl.cdiv(B, n_tiles), 16)   # 16-row multiple (bf16 sublane packing)
    b_pad = _round_up(B, tb)
    return tb, b_pad


@functools.partial(jax.jit, static_argnames=("n_features", "n_labels"))
def custom_net_regression_forward(x, w0, b0, w_rest, b_rest, *, n_features, n_labels):
    # Input goes straight to the MXU as bf16, so pad/ship it as bf16 (halves
    # the x-tile DMA and removes the in-kernel cast).
    X = x.reshape(-1, n_features).astype(jnp.bfloat16)
    B = X.shape[0]
    nf_pad = w0.shape[0]

    tb, b_pad = _choose_tile(B)
    grid = (b_pad // tb,)

    # Only pad when needed (rows to a tile multiple, features to nf_pad).
    if b_pad != B or nf_pad != n_features:
        X = jnp.pad(X, ((0, b_pad - B), (0, nf_pad - n_features)))

    n_rest = w_rest.shape[0]

    # Tight VMEM budget: resident bf16 weights (+f32 biases), double-buffered
    # bf16 x/out tiles, f32 activation headroom; x2 safety, capped at 8 MiB so
    # v7x keeps scratch headroom for compiler temps and surrounding fusions.
    vmem_bytes = (
        2 * (w0.size * 2 + w_rest.size * 2)          # resident bf16 weights (x2 safety vs buffering)
        + b0.size * 4 + b_rest.size * 4              # f32 biases
        + 2 * (tb * nf_pad * 2 + tb * HMAX * 2)      # double-buffered bf16 x / out tiles
        + 4 * tb * HMAX * 4                          # f32 accumulator / activation temps
    )
    vmem_bytes = int(min(max(2 * vmem_bytes, 2 << 20), 8 << 20))

    out_pad = pl.pallas_call(
        mlp_kernel,
        out_shape=jax.ShapeDtypeStruct((b_pad, HMAX), jnp.bfloat16),
        grid_spec=pltpu.PrefetchScalarGridSpec(
            num_scalar_prefetch=0,
            grid=grid,
            in_specs=[
                pl.BlockSpec((tb, nf_pad), lambda i: (i, 0)),             # x: tiled on batch
                pl.BlockSpec((nf_pad, HMAX), lambda i: (0, 0)),           # w0: VMEM-resident
                pl.BlockSpec((1, HMAX), lambda i: (0, 0)),                # b0: VMEM-resident
                pl.BlockSpec((n_rest, HMAX, HMAX), lambda i: (0, 0, 0)),  # W[1:]: VMEM-resident
                pl.BlockSpec((n_rest, 1, HMAX), lambda i: (0, 0, 0)),     # b[1:]: VMEM-resident
            ],
            out_specs=pl.BlockSpec((tb, HMAX), lambda i: (i, 0)),         # lane-dense bf16 output
        ),
        compiler_params=pltpu.CompilerParams(
            dimension_semantics=("parallel",),   # batch axis shards across TCs (v7x)
            vmem_limit_bytes=vmem_bytes,
        ),
    )(X, w0, b0, w_rest, b_rest)

    # Slice off padding / unused lanes (bf16 read), hand caller f32.
    return out_pad[:B, :n_labels].astype(jnp.float32)


def reference_forward(x, weights, biases, n_features):
    """Pure-JAX f32 reference (eval-mode dropout)."""
    h = x.reshape(-1, n_features).astype(jnp.float32)
    n = len(weights)
    for i in range(n):
        h = h @ weights[i] + biases[i]
        if i < n - 1:
            h = jnp.maximum(h, 0.0)
    return h


if __name__ == "__main__":
    n_features, n_labels = 16, 4
    dims = _layer_dims(n_features, n_labels)  # [16,26,36,46,56,66,76,66,56,46,36,4]

    key = jax.random.PRNGKey(0)
    key, kx = jax.random.split(key)
    weights, biases = _init_params(key, dims)

    # One-time param packing: cached device arrays, never redone per call.
    w0, b0, w_rest, b_rest = pad_params(weights, biases, n_features)

    # input: (2, 4, 16) -> reshape(-1, 16) -> batch of 8 rows
    x = jax.random.normal(kx, (2, 4, n_features), jnp.float32)

    out = custom_net_regression_forward(
        x, w0, b0, w_rest, b_rest, n_features=n_features, n_labels=n_labels)
    out = jax.block_until_ready(out)

    ref = reference_forward(x, weights, biases, n_features)
    # bf16 weights/activations (f32 accumulation per layer) + bf16 output vs an
    # f32 reference -> relaxed tolerance (intentional precision/throughput
    # tradeoff on the bf16-native MXU).
    np.testing.assert_allclose(np.asarray(out), np.asarray(ref), rtol=3e-2, atol=3e-2)
    assert out.shape == (8, n_labels)

    print("KERNEL_OK")
</pallas_src>

<mosaic_0001>
module attributes {stable_mosaic.version = 11 : i64} {
  func.func @mlp_kernel(%arg0: i32, %arg1: memref<16x16xbf16, #tpu.memory_space<vmem>>, %arg2: memref<16x128xbf16, #tpu.memory_space<vmem>>, %arg3: memref<1x128xf32, #tpu.memory_space<vmem>>, %arg4: memref<10x128x128xbf16, #tpu.memory_space<vmem>>, %arg5: memref<10x1x128xf32, #tpu.memory_space<vmem>>, %arg6: memref<16x128xbf16, #tpu.memory_space<vmem>>) attributes {dimension_semantics = [#tpu.dimension_semantics<parallel>], iteration_bounds = array<i64: 1>, scalar_prefetch = 0 : i64, scratch_operands = 0 : i64, tpu.core_type = #tpu.core_type<tc>, window_params = [{transform_indices = @transform_0, window_bounds = array<i64: 16, 16>}, {pipeline_mode = #tpu.pipeline_mode<synchronous>, transform_indices = @transform_1, window_bounds = array<i64: 16, 128>}, {pipeline_mode = #tpu.pipeline_mode<synchronous>, transform_indices = @transform_2, window_bounds = array<i64: 1, 128>}, {pipeline_mode = #tpu.pipeline_mode<synchronous>, transform_indices = @transform_3, window_bounds = array<i64: 10, 128, 128>}, {pipeline_mode = #tpu.pipeline_mode<synchronous>, transform_indices = @transform_4, window_bounds = array<i64: 10, 1, 128>}, {transform_indices = @transform_5, window_bounds = array<i64: 16, 128>}]} {
    %c0 = arith.constant 0 : index
    %c0_0 = arith.constant 0 : index
    %0 = vector.load %arg1[%c0, %c0_0] : memref<16x16xbf16, #tpu.memory_space<vmem>>, vector<16x16xbf16>
    %c0_1 = arith.constant 0 : index
    %c0_2 = arith.constant 0 : index
    %1 = vector.load %arg2[%c0_1, %c0_2] : memref<16x128xbf16, #tpu.memory_space<vmem>>, vector<16x128xbf16>
    %cst = arith.constant dense<0.000000e+00> : vector<16x128xf32>
    %2 = tpu.matmul %0, %1, %cst {dimension_numbers = #tpu.dot_dimension_numbers<[1], [0], [0], [1], [0, 0, 1, 1], [], []>} : vector<16x16xbf16>, vector<16x128xbf16>, vector<16x128xf32> -> vector<16x128xf32>
    %c0_3 = arith.constant 0 : index
    %c0_4 = arith.constant 0 : index
    %3 = vector.load %arg3[%c0_3, %c0_4] : memref<1x128xf32, #tpu.memory_space<vmem>>, vector<1x128xf32>
    %4 = vector.broadcast %3 : vector<1x128xf32> to vector<16x128xf32>
    %5 = arith.addf %2, %4 : vector<16x128xf32>
    %cst_5 = arith.constant 0.000000e+00 : f32
    %6 = vector.broadcast %cst_5 : f32 to vector<16x128xf32>
    %7 = arith.maximumf %5, %6 : vector<16x128xf32>
    %8 = arith.truncf %7 : vector<16x128xf32> to vector<16x128xbf16>
    %c0_6 = arith.constant 0 : index
    %c0_7 = arith.constant 0 : index
    %c0_8 = arith.constant 0 : index
    %9 = vector.load %arg4[%c0_6, %c0_7, %c0_8] : memref<10x128x128xbf16, #tpu.memory_space<vmem>>, vector<1x128x128xbf16>
    %10 = vector.shape_cast %9 : vector<1x128x128xbf16> to vector<128x128xbf16>
    %cst_9 = arith.constant dense<0.000000e+00> : vector<16x128xf32>
    %11 = tpu.matmul %8, %10, %cst_9 {dimension_numbers = #tpu.dot_dimension_numbers<[1], [0], [0], [1], [0, 0, 1, 1], [], []>} : vector<16x128xbf16>, vector<128x128xbf16>, vector<16x128xf32> -> vector<16x128xf32>
    %c0_10 = arith.constant 0 : index
    %c0_11 = arith.constant 0 : index
    %c0_12 = arith.constant 0 : index
    %12 = vector.load %arg5[%c0_10, %c0_11, %c0_12] : memref<10x1x128xf32, #tpu.memory_space<vmem>>, vector<1x1x128xf32>
    %13 = vector.shape_cast %12 : vector<1x1x128xf32> to vector<1x128xf32>
    %14 = vector.broadcast %13 : vector<1x128xf32> to vector<16x128xf32>
    %15 = arith.addf %11, %14 : vector<16x128xf32>
    %cst_13 = arith.constant 0.000000e+00 : f32
    %16 = vector.broadcast %cst_13 : f32 to vector<16x128xf32>
    %17 = arith.maximumf %15, %16 : vector<16x128xf32>
    %18 = arith.truncf %17 : vector<16x128xf32> to vector<16x128xbf16>
    %c1 = arith.constant 1 : index
    %c0_14 = arith.constant 0 : index
    %c0_15 = arith.constant 0 : index
    %19 = vector.load %arg4[%c1, %c0_14, %c0_15] : memref<10x128x128xbf16, #tpu.memory_space<vmem>>, vector<1x128x128xbf16>
    %20 = vector.shape_cast %19 : vector<1x128x128xbf16> to vector<128x128xbf16>
    %cst_16 = arith.constant dense<0.000000e+00> : vector<16x128xf32>
    %21 = tpu.matmul %18, %20, %cst_16 {dimension_numbers = #tpu.dot_dimension_numbers<[1], [0], [0], [1], [0, 0, 1, 1], [], []>} : vector<16x128xbf16>, vector<128x128xbf16>, vector<16x128xf32> -> vector<16x128xf32>
    %c1_17 = arith.constant 1 : index
    %c0_18 = arith.constant 0 : index
    %c0_19 = arith.constant 0 : index
    %22 = vector.load %arg5[%c1_17, %c0_18, %c0_19] : memref<10x1x128xf32, #tpu.memory_space<vmem>>, vector<1x1x128xf32>
    %23 = vector.shape_cast %22 : vector<1x1x128xf32> to vector<1x128xf32>
    %24 = vector.broadcast %23 : vector<1x128xf32> to vector<16x128xf32>
    %25 = arith.addf %21, %24 : vector<16x128xf32>
    %cst_20 = arith.constant 0.000000e+00 : f32
    %26 = vector.broadcast %cst_20 : f32 to vector<16x128xf32>
    %27 = arith.maximumf %25, %26 : vector<16x128xf32>
    %28 = arith.truncf %27 : vector<16x128xf32> to vector<16x128xbf16>
    %c2 = arith.constant 2 : index
    %c0_21 = arith.constant 0 : index
    %c0_22 = arith.constant 0 : index
    %29 = vector.load %arg4[%c2, %c0_21, %c0_22] : memref<10x128x128xbf16, #tpu.memory_space<vmem>>, vector<1x128x128xbf16>
    %30 = vector.shape_cast %29 : vector<1x128x128xbf16> to vector<128x128xbf16>
    %cst_23 = arith.constant dense<0.000000e+00> : vector<16x128xf32>
    %31 = tpu.matmul %28, %30, %cst_23 {dimension_numbers = #tpu.dot_dimension_numbers<[1], [0], [0], [1], [0, 0, 1, 1], [], []>} : vector<16x128xbf16>, vector<128x128xbf16>, vector<16x128xf32> -> vector<16x128xf32>
    %c2_24 = arith.constant 2 : index
    %c0_25 = arith.constant 0 : index
    %c0_26 = arith.constant 0 : index
    %32 = vector.load %arg5[%c2_24, %c0_25, %c0_26] : memref<10x1x128xf32, #tpu.memory_space<vmem>>, vector<1x1x128xf32>
    %33 = vector.shape_cast %32 : vector<1x1x128xf32> to vector<1x128xf32>
    %34 = vector.broadcast %33 : vector<1x128xf32> to vector<16x128xf32>
    %35 = arith.addf %31, %34 : vector<16x128xf32>
    %cst_27 = arith.constant 0.000000e+00 : f32
    %36 = vector.broadcast %cst_27 : f32 to vector<16x128xf32>
    %37 = arith.maximumf %35, %36 : vector<16x128xf32>
    %38 = arith.truncf %37 : vector<16x128xf32> to vector<16x128xbf16>
    %c3 = arith.constant 3 : index
    %c0_28 = arith.constant 0 : index
    %c0_29 = arith.constant 0 : index
    %39 = vector.load %arg4[%c3, %c0_28, %c0_29] : memref<10x128x128xbf16, #tpu.memory_space<vmem>>, vector<1x128x128xbf16>
    %40 = vector.shape_cast %39 : vector<1x128x128xbf16> to vector<128x128xbf16>
    %cst_30 = arith.constant dense<0.000000e+00> : vector<16x128xf32>
    %41 = tpu.matmul %38, %40, %cst_30 {dimension_numbers = #tpu.dot_dimension_numbers<[1], [0], [0], [1], [0, 0, 1, 1], [], []>} : vector<16x128xbf16>, vector<128x128xbf16>, vector<16x128xf32> -> vector<16x128xf32>
    %c3_31 = arith.constant 3 : index
    %c0_32 = arith.constant 0 : index
    %c0_33 = arith.constant 0 : index
    %42 = vector.load %arg5[%c3_31, %c0_32, %c0_33] : memref<10x1x128xf32, #tpu.memory_space<vmem>>, vector<1x1x128xf32>
    %43 = vector.shape_cast %42 : vector<1x1x128xf32> to vector<1x128xf32>
    %44 = vector.broadcast %43 : vector<1x128xf32> to vector<16x128xf32>
    %45 = arith.addf %41, %44 : vector<16x128xf32>
    %cst_34 = arith.constant 0.000000e+00 : f32
    %46 = vector.broadcast %cst_34 : f32 to vector<16x128xf32>
    %47 = arith.maximumf %45, %46 : vector<16x128xf32>
    %48 = arith.truncf %47 : vector<16x128xf32> to vector<16x128xbf16>
    %c4 = arith.constant 4 : index
    %c0_35 = arith.constant 0 : index
    %c0_36 = arith.constant 0 : index
    %49 = vector.load %arg4[%c4, %c0_35, %c0_36] : memref<10x128x128xbf16, #tpu.memory_space<vmem>>, vector<1x128x128xbf16>
    %50 = vector.shape_cast %49 : vector<1x128x128xbf16> to vector<128x128xbf16>
    %cst_37 = arith.constant dense<0.000000e+00> : vector<16x128xf32>
    %51 = tpu.matmul %48, %50, %cst_37 {dimension_numbers = #tpu.dot_dimension_numbers<[1], [0], [0], [1], [0, 0, 1, 1], [], []>} : vector<16x128xbf16>, vector<128x128xbf16>, vector<16x128xf32> -> vector<16x128xf32>
    %c4_38 = arith.constant 4 : index
    %c0_39 = arith.constant 0 : index
    %c0_40 = arith.constant 0 : index
    %52 = vector.load %arg5[%c4_38, %c0_39, %c0_40] : memref<10x1x128xf32, #tpu.memory_space<vmem>>, vector<1x1x128xf32>
    %53 = vector.shape_cast %52 : vector<1x1x128xf32> to vector<1x128xf32>
    %54 = vector.broadcast %53 : vector<1x128xf32> to vector<16x128xf32>
    %55 = arith.addf %51, %54 : vector<16x128xf32>
    %cst_41 = arith.constant 0.000000e+00 : f32
    %56 = vector.broadcast %cst_41 : f32 to vector<16x128xf32>
    %57 = arith.maximumf %55, %56 : vector<16x128xf32>
    %58 = arith.truncf %57 : vector<16x128xf32> to vector<16x128xbf16>
    %c5 = arith.constant 5 : index
    %c0_42 = arith.constant 0 : index
    %c0_43 = arith.constant 0 : index
    %59 = vector.load %arg4[%c5, %c0_42, %c0_43] : memref<10x128x128xbf16, #tpu.memory_space<vmem>>, vector<1x128x128xbf16>
    %60 = vector.shape_cast %59 : vector<1x128x128xbf16> to vector<128x128xbf16>
    %cst_44 = arith.constant dense<0.000000e+00> : vector<16x128xf32>
    %61 = tpu.matmul %58, %60, %cst_44 {dimension_numbers = #tpu.dot_dimension_numbers<[1], [0], [0], [1], [0, 0, 1, 1], [], []>} : vector<16x128xbf16>, vector<128x128xbf16>, vector<16x128xf32> -> vector<16x128xf32>
    %c5_45 = arith.constant 5 : index
    %c0_46 = arith.constant 0 : index
    %c0_47 = arith.constant 0 : index
    %62 = vector.load %arg5[%c5_45, %c0_46, %c0_47] : memref<10x1x128xf32, #tpu.memory_space<vmem>>, vector<1x1x128xf32>
    %63 = vector.shape_cast %62 : vector<1x1x128xf32> to vector<1x128xf32>
    %64 = vector.broadcast %63 : vector<1x128xf32> to vector<16x128xf32>
    %65 = arith.addf %61, %64 : vector<16x128xf32>
    %cst_48 = arith.constant 0.000000e+00 : f32
    %66 = vector.broadcast %cst_48 : f32 to vector<16x128xf32>
    %67 = arith.maximumf %65, %66 : vector<16x128xf32>
    %68 = arith.truncf %67 : vector<16x128xf32> to vector<16x128xbf16>
    %c6 = arith.constant 6 : index
    %c0_49 = arith.constant 0 : index
    %c0_50 = arith.constant 0 : index
    %69 = vector.load %arg4[%c6, %c0_49, %c0_50] : memref<10x128x128xbf16, #tpu.memory_space<vmem>>, vector<1x128x128xbf16>
    %70 = vector.shape_cast %69 : vector<1x128x128xbf16> to vector<128x128xbf16>
    %cst_51 = arith.constant dense<0.000000e+00> : vector<16x128xf32>
    %71 = tpu.matmul %68, %70, %cst_51 {dimension_numbers = #tpu.dot_dimension_numbers<[1], [0], [0], [1], [0, 0, 1, 1], [], []>} : vector<16x128xbf16>, vector<128x128xbf16>, vector<16x128xf32> -> vector<16x128xf32>
    %c6_52 = arith.constant 6 : index
    %c0_53 = arith.constant 0 : index
    %c0_54 = arith.constant 0 : index
    %72 = vector.load %arg5[%c6_52, %c0_53, %c0_54] : memref<10x1x128xf32, #tpu.memory_space<vmem>>, vector<1x1x128xf32>
    %73 = vector.shape_cast %72 : vector<1x1x128xf32> to vector<1x128xf32>
    %74 = vector.broadcast %73 : vector<1x128xf32> to vector<16x128xf32>
    %75 = arith.addf %71, %74 : vector<16x128xf32>
    %cst_55 = arith.constant 0.000000e+00 : f32
    %76 = vector.broadcast %cst_55 : f32 to vector<16x128xf32>
    %77 = arith.maximumf %75, %76 : vector<16x128xf32>
    %78 = arith.truncf %77 : vector<16x128xf32> to vector<16x128xbf16>
    %c7 = arith.constant 7 : index
    %c0_56 = arith.constant 0 : index
    %c0_57 = arith.constant 0 : index
    %79 = vector.load %arg4[%c7, %c0_56, %c0_57] : memref<10x128x128xbf16, #tpu.memory_space<vmem>>, vector<1x128x128xbf16>
    %80 = vector.shape_cast %79 : vector<1x128x128xbf16> to vector<128x128xbf16>
    %cst_58 = arith.constant dense<0.000000e+00> : vector<16x128xf32>
    %81 = tpu.matmul %78, %80, %cst_58 {dimension_numbers = #tpu.dot_dimension_numbers<[1], [0], [0], [1], [0, 0, 1, 1], [], []>} : vector<16x128xbf16>, vector<128x128xbf16>, vector<16x128xf32> -> vector<16x128xf32>
    %c7_59 = arith.constant 7 : index
    %c0_60 = arith.constant 0 : index
    %c0_61 = arith.constant 0 : index
    %82 = vector.load %arg5[%c7_59, %c0_60, %c0_61] : memref<10x1x128xf32, #tpu.memory_space<vmem>>, vector<1x1x128xf32>
    %83 = vector.shape_cast %82 : vector<1x1x128xf32> to vector<1x128xf32>
    %84 = vector.broadcast %83 : vector<1x128xf32> to vector<16x128xf32>
    %85 = arith.addf %81, %84 : vector<16x128xf32>
    %cst_62 = arith.constant 0.000000e+00 : f32
    %86 = vector.broadcast %cst_62 : f32 to vector<16x128xf32>
    %87 = arith.maximumf %85, %86 : vector<16x128xf32>
    %88 = arith.truncf %87 : vector<16x128xf32> to vector<16x128xbf16>
    %c8 = arith.constant 8 : index
    %c0_63 = arith.constant 0 : index
    %c0_64 = arith.constant 0 : index
    %89 = vector.load %arg4[%c8, %c0_63, %c0_64] : memref<10x128x128xbf16, #tpu.memory_space<vmem>>, vector<1x128x128xbf16>
    %90 = vector.shape_cast %89 : vector<1x128x128xbf16> to vector<128x128xbf16>
    %cst_65 = arith.constant dense<0.000000e+00> : vector<16x128xf32>
    %91 = tpu.matmul %88, %90, %cst_65 {dimension_numbers = #tpu.dot_dimension_numbers<[1], [0], [0], [1], [0, 0, 1, 1], [], []>} : vector<16x128xbf16>, vector<128x128xbf16>, vector<16x128xf32> -> vector<16x128xf32>
    %c8_66 = arith.constant 8 : index
    %c0_67 = arith.constant 0 : index
    %c0_68 = arith.constant 0 : index
    %92 = vector.load %arg5[%c8_66, %c0_67, %c0_68] : memref<10x1x128xf32, #tpu.memory_space<vmem>>, vector<1x1x128xf32>
    %93 = vector.shape_cast %92 : vector<1x1x128xf32> to vector<1x128xf32>
    %94 = vector.broadcast %93 : vector<1x128xf32> to vector<16x128xf32>
    %95 = arith.addf %91, %94 : vector<16x128xf32>
    %cst_69 = arith.constant 0.000000e+00 : f32
    %96 = vector.broadcast %cst_69 : f32 to vector<16x128xf32>
    %97 = arith.maximumf %95, %96 : vector<16x128xf32>
    %98 = arith.truncf %97 : vector<16x128xf32> to vector<16x128xbf16>
    %c9 = arith.constant 9 : index
    %c0_70 = arith.constant 0 : index
    %c0_71 = arith.constant 0 : index
    %99 = vector.load %arg4[%c9, %c0_70, %c0_71] : memref<10x128x128xbf16, #tpu.memory_space<vmem>>, vector<1x128x128xbf16>
    %100 = vector.shape_cast %99 : vector<1x128x128xbf16> to vector<128x128xbf16>
    %cst_72 = arith.constant dense<0.000000e+00> : vector<16x128xf32>
    %101 = tpu.matmul %98, %100, %cst_72 {dimension_numbers = #tpu.dot_dimension_numbers<[1], [0], [0], [1], [0, 0, 1, 1], [], []>} : vector<16x128xbf16>, vector<128x128xbf16>, vector<16x128xf32> -> vector<16x128xf32>
    %c9_73 = arith.constant 9 : index
    %c0_74 = arith.constant 0 : index
    %c0_75 = arith.constant 0 : index
    %102 = vector.load %arg5[%c9_73, %c0_74, %c0_75] : memref<10x1x128xf32, #tpu.memory_space<vmem>>, vector<1x1x128xf32>
    %103 = vector.shape_cast %102 : vector<1x1x128xf32> to vector<1x128xf32>
    %104 = vector.broadcast %103 : vector<1x128xf32> to vector<16x128xf32>
    %105 = arith.addf %101, %104 : vector<16x128xf32>
    %106 = arith.truncf %105 : vector<16x128xf32> to vector<16x128xbf16>
    %c0_76 = arith.constant 0 : index
    %c0_77 = arith.constant 0 : index
    %107 = vector.load %arg6[%c0_76, %c0_77] : memref<16x128xbf16, #tpu.memory_space<vmem>>, vector<16x128xbf16>
    tpu.vector_store %arg6[%c0_76, %c0_77], %106 {strides = array<i32>} : memref<16x128xbf16, #tpu.memory_space<vmem>>, vector<16x128xbf16>,
    return
  }
  func.func @transform_0(%arg0: i32) -> (i32, i32) {
    %c0_i32 = arith.constant 0 : i32
    %c0_i32_0 = arith.constant 0 : i32
    return %arg0, %c0_i32 : i32, i32
  }
  func.func @transform_1(%arg0: i32) -> (i32, i32) {
    %c0_i32 = arith.constant 0 : i32
    %c0_i32_0 = arith.constant 0 : i32
    %c0_i32_1 = arith.constant 0 : i32
    return %c0_i32, %c0_i32_0 : i32, i32
  }
  func.func @transform_2(%arg0: i32) -> (i32, i32) {
    %c0_i32 = arith.constant 0 : i32
    %c0_i32_0 = arith.constant 0 : i32
    %c0_i32_1 = arith.constant 0 : i32
    return %c0_i32, %c0_i32_0 : i32, i32
  }
  func.func @transform_3(%arg0: i32) -> (i32, i32, i32) {
    %c0_i32 = arith.constant 0 : i32
    %c0_i32_0 = arith.constant 0 : i32
    %c0_i32_1 = arith.constant 0 : i32
    %c0_i32_2 = arith.constant 0 : i32
    return %c0_i32, %c0_i32_0, %c0_i32_1 : i32, i32, i32
  }
  func.func @transform_4(%arg0: i32) -> (i32, i32, i32) {
    %c0_i32 = arith.constant 0 : i32
    %c0_i32_0 = arith.constant 0 : i32
    %c0_i32_1 = arith.constant 0 : i32
    %c0_i32_2 = arith.constant 0 : i32
    return %c0_i32, %c0_i32_0, %c0_i32_1 : i32, i32, i32
  }
  func.func @transform_5(%arg0: i32) -> (i32, i32) {
    %c0_i32 = arith.constant 0 : i32
    %c0_i32_0 = arith.constant 0 : i32
    return %arg0, %c0_i32 : i32, i32
  }
}

</mosaic_0001>

<bundles_post_ra>
// kernel: custom_net_regression_forward.1
= control target key start
LH: loop header
LB: loop body
LE: loop exit
PB: predicated region body
PF: predicated region fallthrough
CT: control target
= control target key end

     0   :  { %10 = vsyncpa [#allocation3], 0  ;;  %s1806_s18 = smov [#allocation2]   ;;  %s1998_s0 = inlined_call_operand.vmem [shape: bf16[16,16], index: 0, kind: input, shape index: {}]   ;;  %s1999_s1 = inlined_call_operand.vmem [shape: bf16[16,128], index: 1, kind: input, shape index: {}]   ;;  %s2000_s2 = inlined_call_operand.vmem [shape: f32[1,128], index: 2, kind: input, shape index: {}]   ;;  %s2001_s3 = inlined_call_operand.hbm [shape: bf16[10,128,128], index: 3, kind: input, shape index: {}]   ;;  %s2002_s4 = inlined_call_operand.vmem [shape: f32[10,1,128], index: 4, kind: input, shape index: {}]   ;;  %s2003_s5 = inlined_call_operand.vmem [shape: bf16[16,128], index: 5, kind: output, shape index: {}]  }
   0x1   :  { %s22_s19 = sshll.u32 %s1806_s18, 4  ;;  %s1782_s22 = scalar_lea.hbm %s2001_s3, 10240  ;;  %s23_s19 = int_to_ptr.vmem [resolvable:$true] %s22_s19 }
   0x2   :  { %p1783_p0 = scmp.ne.s32.totalorder %s2001_s3, %s1782_s22  ;;  %p1786_p1 = scmp.lt.u32.totalorder %s1782_s22, %s2001_s3 }
   0x4   :  { %p1788_p2 = pnand %p1786_p1, %p1783_p0 }
   0x6   :  { %1791 = shalt.err (!%p1788_p2)
}
   0x7   :  { %s1792_s27 = scalar_lea.vmem %s23_s19, 10240  ;;  %p1797_p4 = scmp.lt.s32.totalorder %s23_s19, %s23_s19 }
   0x8   :  { %p1793_p3 = scmp.ne.s32.totalorder %s23_s19, %s1792_s27  ;;  %p1798_p5 = scmp.lt.s32.totalorder %s1792_s27, %s1792_s27 }
   0xa   :  { %p1799_p6 = por %p1798_p5, %p1797_p4 }
   0xc   :  { %p1800_p7 = pnand %p1799_p6, %p1793_p3 }
   0xe   :  { %1803 = shalt.err (!%p1800_p7)
}
   0xf   :  { %s1807_s28 = smov 64   ;;  %s1808_s29 = smov 4  }
  0x10   :  { %28 = dma.hbm_to_vmem [thread:$0]  %s2001_s3, 10240, %s23_s19, [#allocation3], %s1807_s28, %s1807_s28, %s1808_s29  }
  0x11   :  { %1804 = dma.done.wait [#allocation3], 10240  }
  0x12   :  { %1805 = vsyncadd [#allocation3], 4294957056  ;;  %v1809_v0 = vmov 0.0   ;;  %vm1810_vm0 = vmmov 0   ;;  %v1700_v1 = vld [vmem:[%s1999_s1] sm:$0xff]   ;;  %vm57_vm1 = vcmask 130048  }
  0x13   :  { %1489 = vmatprep.subr.bf16.mxu0 %v1809_v0  ;;  %1491 = vmatprep.mubr.msk.bf16.mxu0 %vm1810_vm0, %v1809_v0  ;;  %v1701_v2 = vld [vmem:[%s1998_s0] sm:$0xff]   ;;  %v1703_v4 = vld [vmem:[#allocation2 + $0x8] sm:$0xff]   ;;  %v1704_v5 = vld [vmem:[#allocation2 + $0x10] sm:$0xff]  }
  0x14   :  { %1495 = vmatprep.subr.bf16.mxu1 %v1809_v0  ;;  %1511 = vmatprep.mubr.msk.bf16.mxu1 %vm1810_vm0, %v1809_v0  ;;  %v1702_v3 = vld [vmem:[#allocation2] sm:$0xff]   ;;  %v1705_v6 = vld [vmem:[#allocation2 + $0x18] sm:$0xff]   ;;  %v1707_v8 = vld [vmem:[#allocation2 + $0x28] sm:$0xff]  }
  0x15   :  { %1490 = vmatpush3.bf16.msra.mxu0 %v1700_v1  ;;  %1496 = vmatpush3.bf16.msra.mxu1 %v1702_v3  ;;  %v1706_v7 = vld [vmem:[#allocation2 + $0x20] sm:$0xff]   ;;  %v1708_v9 = vld [vmem:[#allocation2 + $0x30] sm:$0xff]   ;;  %v1709_v10 = vld [vmem:[#allocation2 + $0x38] sm:$0xff]  }
  0x16   :  { %1515 = vmatprep.subr.bf16.mxu0 %v1809_v0  ;;  %1497 = vmatprep.subr.bf16.mxu1 %v1809_v0  ;;  %v1710_v11 = vld [vmem:[#allocation2 + $0x40] sm:$0xff]   ;;  %v1711_v12 = vld [vmem:[#allocation2 + $0x48] sm:$0xff]   ;;  %v1712_v13 = vld [vmem:[#allocation2 + $0x50] sm:$0xff]  }
  0x17   :  { %v1713_v14 = vld [vmem:[#allocation2 + $0x58] sm:$0xff]   ;;  %v1714_v15 = vld [vmem:[#allocation2 + $0x60] sm:$0xff]   ;;  %v1715_v16 = vld [vmem:[#allocation2 + $0x68] sm:$0xff]  }
  0x18   :  { %1492 = vmatmul.mubr.msk.bf16.vlgmr.msra.gmra.mrb[0].mxu0 %vm57_vm1, %v1701_v2  ;;  %v1285_v17 = vld [vmem:[%s2000_s2] ss:$0 sm:$0xff]  ;;  %v1716_v27 = vld [vmem:[#allocation2 + $0x70] sm:$0xff]   ;;  %v1717_v28 = vld [vmem:[#allocation2 + $0x78] sm:$0xff]  }
  0x19   :  { %1531 = vmatprep.mubr.msk.bf16.mxu0 %vm1810_vm0, %v1809_v0  ;;  %1498 = vmatpush3.bf16.msra.mxu1 %v1703_v4  ;;  %v1718_v29 = vld [vmem:[#allocation2 + $0x80] sm:$0xff]   ;;  %v1719_v30 = vld [vmem:[#allocation2 + $0x88] sm:$0xff]   ;;  %v1720_v31 = vld [vmem:[#allocation2 + $0x90] sm:$0xff]  }
  0x1a   :  { %1499 = vmatprep.subr.bf16.mxu1 %v1809_v0  ;;  %1516 = vmatpush3.bf16.msra.mxu0 %v1710_v11  ;;  %v1721_v32 = vld [vmem:[#allocation2 + $0x98] sm:$0xff]   ;;  %v1722_v33 = vld [vmem:[#allocation2 + $0xa0] sm:$0xff]   ;;  %v1723_v34 = vld [vmem:[#allocation2 + $0xa8] sm:$0xff]  }
  0x1b   :  { %1517 = vmatprep.subr.bf16.mxu0 %v1809_v0  ;;  %v1289_v35 = vld [vmem:[%s2002_s4] ss:$0 sm:$0xff]  ;;  %v1724_v45 = vld [vmem:[#allocation2 + $0xb0] sm:$0xff]   ;;  %v1725_v46 = vld [vmem:[#allocation2 + $0xb8] sm:$0xff]  }
  0x1c   :  { %v1726_v47 = vld [vmem:[#allocation2 + $0xc0] sm:$0xff]   ;;  %v1727_v48 = vld [vmem:[#allocation2 + $0xc8] sm:$0xff]   ;;  %v1728_v49 = vld [vmem:[#allocation2 + $0xd0] sm:$0xff]  }
  0x1d   :  { %1500 = vmatpush3.bf16.msra.mxu1 %v1704_v5  ;;  %v1729_v50 = vld [vmem:[#allocation2 + $0xd8] sm:$0xff]   ;;  %v1730_v51 = vld [vmem:[#allocation2 + $0xe0] sm:$0xff]   ;;  %v1731_v52 = vld [vmem:[#allocation2 + $0xe8] sm:$0xff]  }
  0x1e   :  { %1501 = vmatprep.subr.bf16.mxu1 %v1809_v0  ;;  %1518 = vmatpush3.bf16.msra.mxu0 %v1711_v12  ;;  %v1299_v53 = vld [vmem:[%s2002_s4 + $0x1] ss:$0 sm:$0xff]  ;;  %v1732_v63 = vld [vmem:[#allocation2 + $0xf0] sm:$0xff]   ;;  %v1733_v1 = vld [vmem:[#allocation2 + $0xf8] sm:$0xff]  }
  0x1f   :  { %1519 = vmatprep.subr.bf16.mxu0 %v1809_v0  ;;  %v1734_v2 = vld [vmem:[#allocation2 + $0x100] sm:$0xff]   ;;  %v1735_v3 = vld [vmem:[#allocation2 + $0x108] sm:$0xff]   ;;  %v1736_v4 = vld [vmem:[#allocation2 + $0x110] sm:$0xff]  }
  0x20   :  { %v1737_v5 = vld [vmem:[#allocation2 + $0x118] sm:$0xff]  }
  0x21   :  { %1502 = vmatpush3.bf16.msra.mxu1 %v1705_v6  ;;  %v1738_v6 = vld [vmem:[#allocation2 + $0x120] sm:$0xff]  }
  0x22   :  { %1503 = vmatprep.subr.bf16.mxu1 %v1809_v0  ;;  %1520 = vmatpush3.bf16.msra.mxu0 %v1712_v13 }
  0x23   :  { %1521 = vmatprep.subr.bf16.mxu0 %v1809_v0 }
  0x25   :  { %1504 = vmatpush3.bf16.msra.mxu1 %v1706_v7  ;;  %v1739_v7 = vld [vmem:[#allocation2 + $0x128] sm:$0xff]  }
  0x26   :  { %1505 = vmatprep.subr.bf16.mxu1 %v1809_v0  ;;  %1522 = vmatpush3.bf16.msra.mxu0 %v1713_v14 }
  0x27   :  { %1523 = vmatprep.subr.bf16.mxu0 %v1809_v0 }
  0x29   :  { %1506 = vmatpush3.bf16.msra.mxu1 %v1707_v8  ;;  %v1309_v8 = vld [vmem:[%s2002_s4 + $0x2] ss:$0 sm:$0xff] }
  0x2a   :  { %1507 = vmatprep.subr.bf16.mxu1 %v1809_v0  ;;  %1524 = vmatpush3.bf16.msra.mxu0 %v1714_v15 }
  0x2b   :  { %1525 = vmatprep.subr.bf16.mxu0 %v1809_v0 }
  0x2d   :  { %1508 = vmatpush3.bf16.msra.mxu1 %v1708_v9 }
  0x2e   :  { %1509 = vmatprep.subr.bf16.mxu1 %v1809_v0  ;;  %1526 = vmatpush3.bf16.msra.mxu0 %v1715_v16 }
  0x2f   :  { %1527 = vmatprep.subr.bf16.mxu0 %v1809_v0 }
  0x31   :  { %1510 = vmatpush3.bf16.msra.mxu1 %v1709_v10 }
  0x32   :  { %1535 = vmatprep.subr.bf16.mxu1 %v1809_v0  ;;  %1528 = vmatpush3.bf16.msra.mxu0 %v1716_v27 }
  0x33   :  { %1529 = vmatprep.subr.bf16.mxu0 %v1809_v0 }
  0x36   :  { %1530 = vmatpush3.bf16.msra.mxu0 %v1717_v28 }
  0x37   :  { %1555 = vmatprep.subr.bf16.mxu0 %v1809_v0 }
  0xeb   :  { %v95_v18 = vpop.f32.mrb[0].mxu0 }
  0xec   :  { %v96_v19 = vadd.f32 %v1285_v17, %v95_v18  ;;  %v1493_v20 = vpop.f32.mrb[1].mxu0  ;;  %v1740_v18 = vld [vmem:[#allocation2 + $0x130] sm:$0xff]  }
  0xed   :  { %v98_v21 = vpop.f32.mrb[2].mxu0  ;;  %v1742_v20 = vld [vmem:[#allocation2 + $0x140] sm:$0xff]  }
  0xee   :  { %v99_v22 = vadd.f32 %v1285_v17, %v98_v21  ;;  %v1494_v23 = vpop.f32.mrb[3].mxu0  ;;  %v102_v24 = vmax.f32 %v96_v19, 0.0  ;;  %v1741_v19 = vld [vmem:[#allocation2 + $0x138] sm:$0xff]   ;;  %v1743_v21 = vld [vmem:[#allocation2 + $0x148] sm:$0xff]  }
  0xef   :  { %v1745_v23 = vld [vmem:[#allocation2 + $0x158] sm:$0xff]  }
  0xf0   :  { %v103_v25 = vmax.f32 %v99_v22, 0.0  ;;  %v1744_v22 = vld [vmem:[#allocation2 + $0x150] sm:$0xff]  }
  0xf2   :  { %v104_v26 = vpack.c.bf16 %v103_v25, %v102_v24  ;;  %v1746_v24 = vld [vmem:[#allocation2 + $0x160] sm:$0xff]   ;;  %v1747_v25 = vld [vmem:[#allocation2 + $0x168] sm:$0xff]  }
  0xf4   :  { %1512 = vmatmul.mubr.bf16.vlgmr.msra.gmra.mrb[0].mxu1 %v104_v26  ;;  %v1319_v26 = vld [vmem:[%s2002_s4 + $0x3] ss:$0 sm:$0xff] }
  0xf5   :  { %1551 = vmatprep.mubr.msk.bf16.mxu1 %vm1810_vm0, %v1809_v0  ;;  %1536 = vmatpush3.bf16.msra.mxu1 %v1718_v29 }
  0xf6   :  { %1537 = vmatprep.subr.bf16.mxu1 %v1809_v0 }
  0xf9   :  { %1538 = vmatpush3.bf16.msra.mxu1 %v1719_v30 }
  0xfa   :  { %1539 = vmatprep.subr.bf16.mxu1 %v1809_v0 }
  0xfd   :  { %1540 = vmatpush3.bf16.msra.mxu1 %v1720_v31 }
  0xfe   :  { %1541 = vmatprep.subr.bf16.mxu1 %v1809_v0 }
 0x101   :  { %1542 = vmatpush3.bf16.msra.mxu1 %v1721_v32 }
 0x102   :  { %1543 = vmatprep.subr.bf16.mxu1 %v1809_v0 }
 0x105   :  { %1544 = vmatpush3.bf16.msra.mxu1 %v1722_v33 }
 0x106   :  { %1545 = vmatprep.subr.bf16.mxu1 %v1809_v0 }
 0x109   :  { %1546 = vmatpush3.bf16.msra.mxu1 %v1723_v34 }
 0x10a   :  { %1547 = vmatprep.subr.bf16.mxu1 %v1809_v0 }
 0x10d   :  { %1548 = vmatpush3.bf16.msra.mxu1 %v1724_v45 }
 0x10e   :  { %1549 = vmatprep.subr.bf16.mxu1 %v1809_v0 }
 0x111   :  { %1550 = vmatpush3.bf16.msra.mxu1 %v1725_v46 }
 0x112   :  { %1575 = vmatprep.subr.bf16.mxu1 %v1809_v0 }
 0x1c7   :  { %v210_v36 = vpop.f32.mrb[0].mxu1 }
 0x1c8   :  { %v211_v37 = vadd.f32 %v1289_v35, %v210_v36  ;;  %v1513_v38 = vpop.f32.mrb[1].mxu1  ;;  %v1748_v36 = vld [vmem:[#allocation2 + $0x170] sm:$0xff]  }
 0x1c9   :  { %v213_v39 = vpop.f32.mrb[2].mxu1  ;;  %v1750_v38 = vld [vmem:[#allocation2 + $0x180] sm:$0xff]  }
 0x1ca   :  { %v214_v40 = vadd.f32 %v1289_v35, %v213_v39  ;;  %v1514_v41 = vpop.f32.mrb[3].mxu1  ;;  %v217_v42 = vmax.f32 %v211_v37, 0.0  ;;  %v1749_v37 = vld [vmem:[#allocation2 + $0x178] sm:$0xff]   ;;  %v1751_v39 = vld [vmem:[#allocation2 + $0x188] sm:$0xff]  }
 0x1cb   :  { %v1753_v41 = vld [vmem:[#allocation2 + $0x198] sm:$0xff]  }
 0x1cc   :  { %v218_v43 = vmax.f32 %v214_v40, 0.0  ;;  %v1752_v40 = vld [vmem:[#allocation2 + $0x190] sm:$0xff]  }
 0x1ce   :  { %v219_v44 = vpack.c.bf16 %v218_v43, %v217_v42  ;;  %v1754_v42 = vld [vmem:[#allocation2 + $0x1a0] sm:$0xff]   ;;  %v1755_v43 = vld [vmem:[#allocation2 + $0x1a8] sm:$0xff]  }
 0x1d0   :  { %1532 = vmatmul.mubr.bf16.vlgmr.msra.gmra.mrb[4].mxu0 %v219_v44  ;;  %v1329_v44 = vld [vmem:[%s2002_s4 + $0x4] ss:$0 sm:$0xff] }
 0x1d1   :  { %1571 = vmatprep.mubr.msk.bf16.mxu0 %vm1810_vm0, %v1809_v0  ;;  %1556 = vmatpush3.bf16.msra.mxu0 %v1726_v47 }
 0x1d2   :  { %1557 = vmatprep.subr.bf16.mxu0 %v1809_v0 }
 0x1d5   :  { %1558 = vmatpush3.bf16.msra.mxu0 %v1727_v48 }
 0x1d6   :  { %1559 = vmatprep.subr.bf16.mxu0 %v1809_v0 }
 0x1d9   :  { %1560 = vmatpush3.bf16.msra.mxu0 %v1728_v49 }
 0x1da   :  { %1561 = vmatprep.subr.bf16.mxu0 %v1809_v0 }
 0x1dd   :  { %1562 = vmatpush3.bf16.msra.mxu0 %v1729_v50 }
 0x1de   :  { %1563 = vmatprep.subr.bf16.mxu0 %v1809_v0 }
 0x1e1   :  { %1564 = vmatpush3.bf16.msra.mxu0 %v1730_v51 }
 0x1e2   :  { %1565 = vmatprep.subr.bf16.mxu0 %v1809_v0 }
 0x1e5   :  { %1566 = vmatpush3.bf16.msra.mxu0 %v1731_v52 }
 0x1e6   :  { %1567 = vmatprep.subr.bf16.mxu0 %v1809_v0 }
 0x1e9   :  { %1568 = vmatpush3.bf16.msra.mxu0 %v1732_v63 }
 0x1ea   :  { %1569 = vmatprep.subr.bf16.mxu0 %v1809_v0 }
 0x1ed   :  { %1570 = vmatpush3.bf16.msra.mxu0 %v1733_v1 }
 0x1ee   :  { %1595 = vmatprep.subr.bf16.mxu0 %v1809_v0 }
 0x2a3   :  { %v327_v54 = vpop.f32.mrb[4].mxu0 }
 0x2a4   :  { %v328_v55 = vadd.f32 %v1299_v53, %v327_v54  ;;  %v1533_v56 = vpop.f32.mrb[5].mxu0  ;;  %v1756_v54 = vld [vmem:[#allocation2 + $0x1b0] sm:$0xff]  }
 0x2a5   :  { %v330_v57 = vpop.f32.mrb[6].mxu0  ;;  %v1758_v56 = vld [vmem:[#allocation2 + $0x1c0] sm:$0xff]  }
 0x2a6   :  { %v331_v58 = vadd.f32 %v1299_v53, %v330_v57  ;;  %v1534_v59 = vpop.f32.mrb[7].mxu0  ;;  %v334_v60 = vmax.f32 %v328_v55, 0.0  ;;  %v1757_v55 = vld [vmem:[#allocation2 + $0x1b8] sm:$0xff]   ;;  %v1759_v57 = vld [vmem:[#allocation2 + $0x1c8] sm:$0xff]  }
 0x2a7   :  { %v1761_v59 = vld [vmem:[#allocation2 + $0x1d8] sm:$0xff]  }
 0x2a8   :  { %v335_v61 = vmax.f32 %v331_v58, 0.0  ;;  %v1760_v58 = vld [vmem:[#allocation2 + $0x1d0] sm:$0xff]  }
 0x2aa   :  { %v336_v62 = vpack.c.bf16 %v335_v61, %v334_v60  ;;  %v1762_v60 = vld [vmem:[#allocation2 + $0x1e0] sm:$0xff]   ;;  %v1763_v61 = vld [vmem:[#allocation2 + $0x1e8] sm:$0xff]  }
 0x2ac   :  { %1552 = vmatmul.mubr.bf16.vlgmr.msra.gmra.mrb[4].mxu1 %v336_v62  ;;  %v1339_v62 = vld [vmem:[%s2002_s4 + $0x5] ss:$0 sm:$0xff] }
 0x2ad   :  { %1591 = vmatprep.mubr.msk.bf16.mxu1 %vm1810_vm0, %v1809_v0  ;;  %1576 = vmatpush3.bf16.msra.mxu1 %v1734_v2 }
 0x2ae   :  { %1577 = vmatprep.subr.bf16.mxu1 %v1809_v0 }
 0x2b1   :  { %1578 = vmatpush3.bf16.msra.mxu1 %v1735_v3 }
 0x2b2   :  { %1579 = vmatprep.subr.bf16.mxu1 %v1809_v0 }
 0x2b5   :  { %1580 = vmatpush3.bf16.msra.mxu1 %v1736_v4 }
 0x2b6   :  { %1581 = vmatprep.subr.bf16.mxu1 %v1809_v0 }
 0x2b9   :  { %1582 = vmatpush3.bf16.msra.mxu1 %v1737_v5 }
 0x2ba   :  { %1583 = vmatprep.subr.bf16.mxu1 %v1809_v0 }
 0x2bd   :  { %1584 = vmatpush3.bf16.msra.mxu1 %v1738_v6 }
 0x2be   :  { %1585 = vmatprep.subr.bf16.mxu1 %v1809_v0 }
 0x2c1   :  { %1586 = vmatpush3.bf16.msra.mxu1 %v1739_v7 }
 0x2c2   :  { %1587 = vmatprep.subr.bf16.mxu1 %v1809_v0 }
 0x2c5   :  { %1588 = vmatpush3.bf16.msra.mxu1 %v1740_v18 }
 0x2c6   :  { %1589 = vmatprep.subr.bf16.mxu1 %v1809_v0 }
 0x2c9   :  { %1590 = vmatpush3.bf16.msra.mxu1 %v1741_v19 }
 0x2ca   :  { %1615 = vmatprep.subr.bf16.mxu1 %v1809_v0 }
 0x37f   :  { %v444_v9 = vpop.f32.mrb[4].mxu1 }
 0x380   :  { %v445_v10 = vadd.f32 %v1309_v8, %v444_v9  ;;  %v1553_v11 = vpop.f32.mrb[5].mxu1  ;;  %v1764_v9 = vld [vmem:[#allocation2 + $0x1f0] sm:$0xff]  }
 0x381   :  { %v447_v12 = vpop.f32.mrb[6].mxu1  ;;  %v1766_v11 = vld [vmem:[#allocation2 + $0x200] sm:$0xff]  }
 0x382   :  { %v448_v13 = vadd.f32 %v1309_v8, %v447_v12  ;;  %v1554_v14 = vpop.f32.mrb[7].mxu1  ;;  %v451_v15 = vmax.f32 %v445_v10, 0.0  ;;  %v1765_v10 = vld [vmem:[#allocation2 + $0x1f8] sm:$0xff]   ;;  %v1767_v12 = vld [vmem:[#allocation2 + $0x208] sm:$0xff]  }
 0x383   :  { %v1769_v14 = vld [vmem:[#allocation2 + $0x218] sm:$0xff]  }
 0x384   :  { %v452_v16 = vmax.f32 %v448_v13, 0.0  ;;  %v1768_v13 = vld [vmem:[#allocation2 + $0x210] sm:$0xff]  }
 0x386   :  { %v453_v17 = vpack.c.bf16 %v452_v16, %v451_v15  ;;  %v1770_v15 = vld [vmem:[#allocation2 + $0x220] sm:$0xff]   ;;  %v1771_v16 = vld [vmem:[#allocation2 + $0x228] sm:$0xff]  }
 0x388   :  { %1572 = vmatmul.mubr.bf16.vlgmr.msra.gmra.mrb[8].mxu0 %v453_v17  ;;  %v1349_v17 = vld [vmem:[%s2002_s4 + $0x6] ss:$0 sm:$0xff] }
 0x389   :  { %1611 = vmatprep.mubr.msk.bf16.mxu0 %vm1810_vm0, %v1809_v0  ;;  %1596 = vmatpush3.bf16.msra.mxu0 %v1742_v20 }
 0x38a   :  { %1597 = vmatprep.subr.bf16.mxu0 %v1809_v0 }
 0x38d   :  { %1598 = vmatpush3.bf16.msra.mxu0 %v1743_v21 }
 0x38e   :  { %1599 = vmatprep.subr.bf16.mxu0 %v1809_v0 }
 0x391   :  { %1600 = vmatpush3.bf16.msra.mxu0 %v1744_v22 }
 0x392   :  { %1601 = vmatprep.subr.bf16.mxu0 %v1809_v0 }
 0x395   :  { %1602 = vmatpush3.bf16.msra.mxu0 %v1745_v23 }
 0x396   :  { %1603 = vmatprep.subr.bf16.mxu0 %v1809_v0 }
 0x399   :  { %1604 = vmatpush3.bf16.msra.mxu0 %v1746_v24 }
 0x39a   :  { %1605 = vmatprep.subr.bf16.mxu0 %v1809_v0 }
 0x39d   :  { %1606 = vmatpush3.bf16.msra.mxu0 %v1747_v25 }
 0x39e   :  { %1607 = vmatprep.subr.bf16.mxu0 %v1809_v0 }
 0x3a1   :  { %1608 = vmatpush3.bf16.msra.mxu0 %v1748_v36 }
 0x3a2   :  { %1609 = vmatprep.subr.bf16.mxu0 %v1809_v0 }
 0x3a5   :  { %1610 = vmatpush3.bf16.msra.mxu0 %v1749_v37 }
 0x3a6   :  { %1635 = vmatprep.subr.bf16.mxu0 %v1809_v0 }
 0x45b   :  { %v561_v27 = vpop.f32.mrb[8].mxu0 }
 0x45c   :  { %v562_v28 = vadd.f32 %v1319_v26, %v561_v27  ;;  %v1573_v29 = vpop.f32.mrb[9].mxu0  ;;  %v1772_v27 = vld [vmem:[#allocation2 + $0x230] sm:$0xff]  }
 0x45d   :  { %v564_v30 = vpop.f32.mrb[10].mxu0  ;;  %v1774_v29 = vld [vmem:[#allocation2 + $0x240] sm:$0xff]  }
 0x45e   :  { %v565_v31 = vadd.f32 %v1319_v26, %v564_v30  ;;  %v1574_v32 = vpop.f32.mrb[11].mxu0  ;;  %v568_v33 = vmax.f32 %v562_v28, 0.0  ;;  %v1773_v28 = vld [vmem:[#allocation2 + $0x238] sm:$0xff]   ;;  %v1775_v30 = vld [vmem:[#allocation2 + $0x248] sm:$0xff]  }
 0x45f   :  { %v1777_v32 = vld [vmem:[#allocation2 + $0x258] sm:$0xff]  }
 0x460   :  { %v569_v34 = vmax.f32 %v565_v31, 0.0  ;;  %v1776_v31 = vld [vmem:[#allocation2 + $0x250] sm:$0xff]  }
 0x462   :  { %v570_v35 = vpack.c.bf16 %v569_v34, %v568_v33  ;;  %v1778_v33 = vld [vmem:[#allocation2 + $0x260] sm:$0xff]   ;;  %v1779_v34 = vld [vmem:[#allocation2 + $0x268] sm:$0xff]  }
 0x464   :  { %1592 = vmatmul.mubr.bf16.vlgmr.msra.gmra.mrb[8].mxu1 %v570_v35  ;;  %v1359_v35 = vld [vmem:[%s2002_s4 + $0x7] ss:$0 sm:$0xff] }
 0x465   :  { %1631 = vmatprep.mubr.msk.bf16.mxu1 %vm1810_vm0, %v1809_v0  ;;  %1616 = vmatpush3.bf16.msra.mxu1 %v1750_v38 }
 0x466   :  { %1617 = vmatprep.subr.bf16.mxu1 %v1809_v0 }
 0x469   :  { %1618 = vmatpush3.bf16.msra.mxu1 %v1751_v39 }
 0x46a   :  { %1619 = vmatprep.subr.bf16.mxu1 %v1809_v0 }
 0x46d   :  { %1620 = vmatpush3.bf16.msra.mxu1 %v1752_v40 }
 0x46e   :  { %1621 = vmatprep.subr.bf16.mxu1 %v1809_v0 }
 0x471   :  { %1622 = vmatpush3.bf16.msra.mxu1 %v1753_v41 }
 0x472   :  { %1623 = vmatprep.subr.bf16.mxu1 %v1809_v0 }
 0x475   :  { %1624 = vmatpush3.bf16.msra.mxu1 %v1754_v42 }
 0x476   :  { %1625 = vmatprep.subr.bf16.mxu1 %v1809_v0 }
 0x479   :  { %1626 = vmatpush3.bf16.msra.mxu1 %v1755_v43 }
 0x47a   :  { %1627 = vmatprep.subr.bf16.mxu1 %v1809_v0 }
 0x47d   :  { %1628 = vmatpush3.bf16.msra.mxu1 %v1756_v54 }
 0x47e   :  { %1629 = vmatprep.subr.bf16.mxu1 %v1809_v0 }
 0x481   :  { %1630 = vmatpush3.bf16.msra.mxu1 %v1757_v55 }
 0x482   :  { %1655 = vmatprep.subr.bf16.mxu1 %v1809_v0 }
 0x537   :  { %v678_v45 = vpop.f32.mrb[8].mxu1 }
 0x538   :  { %v679_v46 = vadd.f32 %v1329_v44, %v678_v45  ;;  %v1593_v47 = vpop.f32.mrb[9].mxu1  ;;  %v1780_v45 = vld [vmem:[#allocation2 + $0x270] sm:$0xff]  }
 0x539   :  { %v681_v48 = vpop.f32.mrb[10].mxu1  ;;  %v1369_v47 = vld [vmem:[%s2002_s4 + $0x8] ss:$0 sm:$0xff] }
 0x53a   :  { %v682_v49 = vadd.f32 %v1329_v44, %v681_v48  ;;  %v1594_v50 = vpop.f32.mrb[11].mxu1  ;;  %v685_v51 = vmax.f32 %v679_v46, 0.0  ;;  %v1781_v46 = vld [vmem:[#allocation2 + $0x278] sm:$0xff]  }
 0x53c   :  { %v686_v52 = vmax.f32 %v682_v49, 0.0 }
 0x53e   :  { %v687_v53 = vpack.c.bf16 %v686_v52, %v685_v51 }
 0x540   :  { %1612 = vmatmul.mubr.bf16.vlgmr.msra.gmra.mrb[12].mxu0 %v687_v53 }
 0x541   :  { %1651 = vmatprep.mubr.msk.bf16.mxu0 %vm1810_vm0, %v1809_v0  ;;  %1636 = vmatpush3.bf16.msra.mxu0 %v1758_v56 }
 0x542   :  { %1637 = vmatprep.subr.bf16.mxu0 %v1809_v0 }
 0x545   :  { %1638 = vmatpush3.bf16.msra.mxu0 %v1759_v57 }
 0x546   :  { %1639 = vmatprep.subr.bf16.mxu0 %v1809_v0 }
 0x549   :  { %1640 = vmatpush3.bf16.msra.mxu0 %v1760_v58 }
 0x54a   :  { %1641 = vmatprep.subr.bf16.mxu0 %v1809_v0 }
 0x54d   :  { %1642 = vmatpush3.bf16.msra.mxu0 %v1761_v59 }
 0x54e   :  { %1643 = vmatprep.subr.bf16.mxu0 %v1809_v0 }
 0x551   :  { %1644 = vmatpush3.bf16.msra.mxu0 %v1762_v60 }
 0x552   :  { %1645 = vmatprep.subr.bf16.mxu0 %v1809_v0 }
 0x555   :  { %1646 = vmatpush3.bf16.msra.mxu0 %v1763_v61 }
 0x556   :  { %1647 = vmatprep.subr.bf16.mxu0 %v1809_v0 }
 0x559   :  { %1648 = vmatpush3.bf16.msra.mxu0 %v1764_v9 }
 0x55a   :  { %1649 = vmatprep.subr.bf16.mxu0 %v1809_v0 }
 0x55d   :  { %1650 = vmatpush3.bf16.msra.mxu0 %v1765_v10 }
 0x55e   :  { %1675 = vmatprep.subr.bf16.mxu0 %v1809_v0 }
 0x613   :  { %v795_v63 = vpop.f32.mrb[12].mxu0 }
 0x614   :  { %v796_v1 = vadd.f32 %v1339_v62, %v795_v63  ;;  %v1613_v2 = vpop.f32.mrb[13].mxu0 }
 0x615   :  { %v798_v3 = vpop.f32.mrb[14].mxu0 }
 0x616   :  { %v799_v4 = vadd.f32 %v1339_v62, %v798_v3  ;;  %v1614_v5 = vpop.f32.mrb[15].mxu0  ;;  %v802_v6 = vmax.f32 %v796_v1, 0.0 }
 0x618   :  { %v803_v7 = vmax.f32 %v799_v4, 0.0 }
 0x61a   :  { %v804_v8 = vpack.c.bf16 %v803_v7, %v802_v6 }
 0x61c   :  { %1632 = vmatmul.mubr.bf16.vlgmr.msra.gmra.mrb[12].mxu1 %v804_v8 }
 0x61d   :  { %1671 = vmatprep.mubr.msk.bf16.mxu1 %vm1810_vm0, %v1809_v0  ;;  %1656 = vmatpush3.bf16.msra.mxu1 %v1766_v11 }
 0x61e   :  { %1657 = vmatprep.subr.bf16.mxu1 %v1809_v0 }
 0x621   :  { %1658 = vmatpush3.bf16.msra.mxu1 %v1767_v12 }
 0x622   :  { %1659 = vmatprep.subr.bf16.mxu1 %v1809_v0 }
 0x625   :  { %1660 = vmatpush3.bf16.msra.mxu1 %v1768_v13 }
 0x626   :  { %1661 = vmatprep.subr.bf16.mxu1 %v1809_v0 }
 0x629   :  { %1662 = vmatpush3.bf16.msra.mxu1 %v1769_v14 }
 0x62a   :  { %1663 = vmatprep.subr.bf16.mxu1 %v1809_v0 }
 0x62d   :  { %1664 = vmatpush3.bf16.msra.mxu1 %v1770_v15 }
 0x62e   :  { %1665 = vmatprep.subr.bf16.mxu1 %v1809_v0 }
 0x631   :  { %1666 = vmatpush3.bf16.msra.mxu1 %v1771_v16 }
 0x632   :  { %1667 = vmatprep.subr.bf16.mxu1 %v1809_v0 }
 0x635   :  { %1668 = vmatpush3.bf16.msra.mxu1 %v1772_v27 }
 0x636   :  { %1669 = vmatprep.subr.bf16.mxu1 %v1809_v0 }
 0x639   :  { %1670 = vmatpush3.bf16.msra.mxu1 %v1773_v28 }
 0x6ef   :  { %v912_v18 = vpop.f32.mrb[12].mxu1 }
 0x6f0   :  { %v913_v19 = vadd.f32 %v1349_v17, %v912_v18  ;;  %v1633_v20 = vpop.f32.mrb[13].mxu1 }
 0x6f1   :  { %v915_v21 = vpop.f32.mrb[14].mxu1 }
 0x6f2   :  { %v916_v22 = vadd.f32 %v1349_v17, %v915_v21  ;;  %v1634_v23 = vpop.f32.mrb[15].mxu1  ;;  %v919_v24 = vmax.f32 %v913_v19, 0.0 }
 0x6f4   :  { %v920_v25 = vmax.f32 %v916_v22, 0.0 }
 0x6f6   :  { %v921_v26 = vpack.c.bf16 %v920_v25, %v919_v24 }
 0x6f8   :  { %1652 = vmatmul.mubr.bf16.vlgmr.msra.gmra.mrb[16].mxu0 %v921_v26 }
 0x6f9   :  { %1691 = vmatprep.mubr.msk.bf16.mxu0 %vm1810_vm0, %v1809_v0  ;;  %1676 = vmatpush3.bf16.msra.mxu0 %v1774_v29 }
 0x6fa   :  { %1677 = vmatprep.subr.bf16.mxu0 %v1809_v0 }
 0x6fd   :  { %1678 = vmatpush3.bf16.msra.mxu0 %v1775_v30 }
 0x6fe   :  { %1679 = vmatprep.subr.bf16.mxu0 %v1809_v0 }
 0x701   :  { %1680 = vmatpush3.bf16.msra.mxu0 %v1776_v31 }
 0x702   :  { %1681 = vmatprep.subr.bf16.mxu0 %v1809_v0 }
 0x705   :  { %1682 = vmatpush3.bf16.msra.mxu0 %v1777_v32 }
 0x706   :  { %1683 = vmatprep.subr.bf16.mxu0 %v1809_v0 }
 0x709   :  { %1684 = vmatpush3.bf16.msra.mxu0 %v1778_v33 }
 0x70a   :  { %1685 = vmatprep.subr.bf16.mxu0 %v1809_v0 }
 0x70d   :  { %1686 = vmatpush3.bf16.msra.mxu0 %v1779_v34 }
 0x70e   :  { %1687 = vmatprep.subr.bf16.mxu0 %v1809_v0 }
 0x711   :  { %1688 = vmatpush3.bf16.msra.mxu0 %v1780_v45 }
 0x712   :  { %1689 = vmatprep.subr.bf16.mxu0 %v1809_v0  ;;  %v1379_v0 = vld [vmem:[%s2002_s4 + $0x9] ss:$0 sm:$0xff] }
 0x715   :  { %1690 = vmatpush3.bf16.msra.mxu0 %v1781_v46 }
 0x7cb   :  { %v1029_v36 = vpop.f32.mrb[16].mxu0 }
 0x7cc   :  { %v1030_v37 = vadd.f32 %v1359_v35, %v1029_v36  ;;  %v1653_v38 = vpop.f32.mrb[17].mxu0 }
 0x7cd   :  { %v1032_v39 = vpop.f32.mrb[18].mxu0 }
 0x7ce   :  { %v1033_v40 = vadd.f32 %v1359_v35, %v1032_v39  ;;  %v1654_v41 = vpop.f32.mrb[19].mxu0  ;;  %v1036_v42 = vmax.f32 %v1030_v37, 0.0 }
 0x7d0   :  { %v1037_v43 = vmax.f32 %v1033_v40, 0.0 }
 0x7d2   :  { %v1038_v44 = vpack.c.bf16 %v1037_v43, %v1036_v42 }
 0x7d4   :  { %1672 = vmatmul.mubr.bf16.vlgmr.msra.gmra.mrb[16].mxu1 %v1038_v44 }
 0x8a7   :  { %v1146_v48 = vpop.f32.mrb[16].mxu1 }
 0x8a8   :  { %v1147_v49 = vadd.f32 %v1369_v47, %v1146_v48  ;;  %v1673_v50 = vpop.f32.mrb[17].mxu1 }
 0x8a9   :  { %v1149_v51 = vpop.f32.mrb[18].mxu1 }
 0x8aa   :  { %v1150_v52 = vadd.f32 %v1369_v47, %v1149_v51  ;;  %v1674_v53 = vpop.f32.mrb[19].mxu1  ;;  %v1153_v54 = vmax.f32 %v1147_v49, 0.0 }
 0x8ac   :  { %v1154_v55 = vmax.f32 %v1150_v52, 0.0 }
 0x8ae   :  { %v1155_v56 = vpack.c.bf16 %v1154_v55, %v1153_v54 }
 0x8b0   :  { %1692 = vmatmul.mubr.bf16.vlgmr.msra.gmra.mrb[20].mxu0 %v1155_v56 }
 0x983   :  { %v1263_v57 = vpop.f32.mrb[20].mxu0 }
 0x984   :  { %v1693_v58 = vpop.f32.mrb[21].mxu0  ;;  %v1264_v60 = vadd.f32 %v1379_v0, %v1263_v57 }
 0x985   :  { %v1266_v59 = vpop.f32.mrb[22].mxu0 }
 0x986   :  { %v1267_v61 = vadd.f32 %v1379_v0, %v1266_v59  ;;  %v1694_v62 = vpop.f32.mrb[23].mxu0 }
 0x988   :  { %v1395_v63 = vpack.c.bf16 %v1267_v61, %v1264_v60 }
 0x98a   :  { %1396 = vst [vmem:[%s2003_s5] sm:$0xff] %v1395_v63  }
 0x98b   :  { %1284 = vsyncpa [#allocation3], 1 }

</bundles_post_ra>
